<compile_context>
chip_gen: v7x
topology: tpu7x:2x2x1
jax: 0.10.0
libtpu: 0.0.40
codegen_flags: <defaults>
</compile_context>

<pallas_src>
import functools

import jax
import jax.numpy as jnp
from jax.experimental import pallas as pl
from jax.experimental.pallas import tpu as pltpu

BN_EPS = 1e-5


def _round_up(x, m):
  return ((x + m - 1) // m) * m


def _pick_row_tile(m):
  # Prefer a 128-row MXU-friendly tile; fall back to any divisor, else no tiling.
  for tm in (128, 256, 512, 64, 32, 16, 8):
    if m % tm == 0:
      return tm
  return m


def basic_conv2d_kernel(x_ref, w_ref, gamma_ref, beta_ref, o_ref,
                        stats_ref, ss_ref, *, m_total):
  """Two-pass fused conv(im2col matmul) + batchnorm + relu.

  Grid: (pass, row_tile).  pass 0 -> accumulate BN stats, pass 1 -> normalize.

  x_ref:     (TM, K)          im2col row tile
  w_ref:     (K, Cout_pad)    im2col weights
  gamma_ref: (1, Cout_pad)    BN scale
  beta_ref:  (1, Cout_pad)    BN shift
  o_ref:     (TM, Cout_pad)   lane-dense output tile
  stats_ref: (2, Cout_pad)    VMEM scratch: [sum, sum_sq] per channel
  ss_ref:    (2, Cout_pad)    VMEM scratch: [scale, shift] per channel
  """
  p = pl.program_id(0)   # 0 = stats pass, 1 = normalize pass
  t = pl.program_id(1)   # row tile index

  # Convolution for this row tile: one big MXU contraction (no per-tap loop).
  acc = jnp.dot(x_ref[...], w_ref[...], preferred_element_type=jnp.float32)

  @pl.when(jnp.logical_and(p == 0, t == 0))
  def _init_stats():
    stats_ref[...] = jnp.zeros_like(stats_ref)

  @pl.when(p == 0)
  def _accumulate_stats():
    stats_ref[0:1, :] = stats_ref[0:1, :] + jnp.sum(acc, axis=0, keepdims=True)
    stats_ref[1:2, :] = stats_ref[1:2, :] + jnp.sum(acc * acc, axis=0,
                                                    keepdims=True)

  @pl.when(jnp.logical_and(p == 1, t == 0))
  def _finalize_stats():
    inv_m = jnp.float32(1.0 / m_total)
    mean = stats_ref[0:1, :] * inv_m
    var = stats_ref[1:2, :] * inv_m - mean * mean      # biased variance
    scale = gamma_ref[...] * jax.lax.rsqrt(var + BN_EPS)
    ss_ref[0:1, :] = scale
    ss_ref[1:2, :] = beta_ref[...] - mean * scale

  @pl.when(p == 1)
  def _normalize_and_store():
    scale = ss_ref[0:1, :]
    shift = ss_ref[1:2, :]
    o_ref[...] = jnp.maximum(acc * scale + shift, 0.0).astype(o_ref.dtype)


def basic_conv2d(x_nchw, weight_oihw, gamma, beta, *, padding=1):
  """PyTorch-semantics BasicConv2d forward. Input/output are NCHW, stride=1."""
  N, Cin, H, W = x_nchw.shape
  Cout, Cin2, KH, KW = weight_oihw.shape
  assert Cin == Cin2

  Hout = H + 2 * padding - KH + 1
  Wout = W + 2 * padding - KW + 1
  M = N * Hout * Wout

  # Tile-aligned channel padding: sublane (8) for Cin, lane (128) for Cout.
  Cin_pad = _round_up(Cin, 8)
  Cout_pad = _round_up(Cout, 128)
  K = KH * KW * Cin_pad

  # ---- wrapper-side layout prep (im2col, channel padding) -------------------
  x_nhwc = jnp.transpose(x_nchw, (0, 2, 3, 1))
  x_nhwc = jnp.pad(
      x_nhwc,
      ((0, 0), (padding, padding), (padding, padding), (0, Cin_pad - Cin)))
  patches = [x_nhwc[:, kh:kh + Hout, kw:kw + Wout, :]
             for kh in range(KH) for kw in range(KW)]
  x_im2col = jnp.concatenate(patches, axis=-1).reshape(M, K)

  w_hwio = jnp.transpose(weight_oihw, (2, 3, 1, 0))            # (KH,KW,Cin,Cout)
  w_hwio = jnp.pad(
      w_hwio, ((0, 0), (0, 0), (0, Cin_pad - Cin), (0, Cout_pad - Cout)))
  w2 = w_hwio.reshape(K, Cout_pad)

  gamma2 = jnp.pad(gamma.reshape(1, Cout).astype(jnp.float32),
                   ((0, 0), (0, Cout_pad - Cout)), constant_values=1.0)
  beta2 = jnp.pad(beta.reshape(1, Cout).astype(jnp.float32),
                  ((0, 0), (0, Cout_pad - Cout)))

  # ---- tiling ---------------------------------------------------------------
  TM = _pick_row_tile(M)
  n_tiles = M // TM
  # Small shapes fit default scoped VMEM; for big shapes re-derive TM against
  # v7x's 64 MiB VMEM (2 bufs per input) and set vmem_limit_bytes explicitly.

  kernel = functools.partial(basic_conv2d_kernel, m_total=M)

  out2d = pl.pallas_call(
      kernel,
      out_shape=jax.ShapeDtypeStruct((M, Cout_pad), x_nchw.dtype),
      grid_spec=pltpu.PrefetchScalarGridSpec(
          num_scalar_prefetch=0,
          grid=(2, n_tiles),
          in_specs=[
              pl.BlockSpec((TM, K), lambda p, t: (t, 0)),
              pl.BlockSpec((K, Cout_pad), lambda p, t: (0, 0)),
              pl.BlockSpec((1, Cout_pad), lambda p, t: (0, 0)),
              pl.BlockSpec((1, Cout_pad), lambda p, t: (0, 0)),
          ],
          # During pass 0 all tiles alias block 0 (never written -> no garbage
          # writeback); pass 1 writes each block exactly once, lane-dense.
          out_specs=pl.BlockSpec((TM, Cout_pad), lambda p, t: (t * p, 0)),
          scratch_shapes=[
              pltpu.VMEM((2, Cout_pad), jnp.float32),   # [sum, sum_sq]
              pltpu.VMEM((2, Cout_pad), jnp.float32),   # [scale, shift]
          ]),
      compiler_params=pltpu.CompilerParams(
          dimension_semantics=("arbitrary", "arbitrary")),
  )(x_im2col, w2, gamma2, beta2)

  out_nhwc = out2d[:, :Cout].reshape(N, Hout, Wout, Cout)
  return jnp.transpose(out_nhwc, (0, 3, 1, 2))


def basic_conv2d_reference(x, w, gamma, beta, *, padding=1):
  """Pure-JAX reference (NCHW) with identical semantics."""
  conv = jax.lax.conv_general_dilated(
      x, w, window_strides=(1, 1),
      padding=[(padding, padding), (padding, padding)],
      dimension_numbers=("NCHW", "OIHW", "NCHW"))
  mean = jnp.mean(conv, axis=(0, 2, 3), keepdims=True)
  var = jnp.mean((conv - mean) ** 2, axis=(0, 2, 3), keepdims=True)
  xhat = (conv - mean) * jax.lax.rsqrt(var + BN_EPS)
  y = gamma.reshape(1, -1, 1, 1) * xhat + beta.reshape(1, -1, 1, 1)
  return jnp.maximum(y, 0.0)


if __name__ == "__main__":
  # Small deterministic instantiation: BasicConv2d(4, 8, kernel_size=3, padding=1)
  N, Cin, H, W = 2, 4, 16, 16
  Cout, KH, KW = 8, 3, 3

  key = jax.random.PRNGKey(0)
  kx, kw = jax.random.split(key)

  x = jax.random.normal(kx, (N, Cin, H, W), dtype=jnp.float32)
  bound = 1.0 / (Cin * KH * KW) ** 0.5
  weight = jax.random.uniform(kw, (Cout, Cin, KH, KW),
                              minval=-bound, maxval=bound, dtype=jnp.float32)
  gamma = jnp.ones((Cout,), jnp.float32)   # BatchNorm2d default init
  beta = jnp.zeros((Cout,), jnp.float32)

  out = basic_conv2d(x, weight, gamma, beta, padding=1)
  out = jax.block_until_ready(out)

  ref = basic_conv2d_reference(x, weight, gamma, beta, padding=1)
  ref = jax.block_until_ready(ref)

  assert out.shape == (N, Cout, H, W), out.shape
  assert jnp.allclose(out, ref, atol=1e-3, rtol=1e-3), (
      float(jnp.max(jnp.abs(out - ref))))

  print("KERNEL_OK")
</pallas_src>

<mosaic_0001>
module attributes {stable_mosaic.version = 11 : i64} {
  func.func @basic_conv2d_kernel(%arg0: i32, %arg1: i32, %arg2: memref<128x72xf32, #tpu.memory_space<vmem>>, %arg3: memref<72x128xf32, #tpu.memory_space<vmem>>, %arg4: memref<1x128xf32, #tpu.memory_space<vmem>>, %arg5: memref<1x128xf32, #tpu.memory_space<vmem>>, %arg6: memref<128x128xf32, #tpu.memory_space<vmem>>, %arg7: memref<2x128xf32, #tpu.memory_space<vmem>>, %arg8: memref<2x128xf32, #tpu.memory_space<vmem>>) attributes {dimension_semantics = [#tpu.dimension_semantics<arbitrary>, #tpu.dimension_semantics<arbitrary>], iteration_bounds = array<i64: 2, 4>, scalar_prefetch = 0 : i64, scratch_operands = 2 : i64, tpu.core_type = #tpu.core_type<tc>, window_params = [{transform_indices = @transform_0, window_bounds = array<i64: 128, 72>}, {pipeline_mode = #tpu.pipeline_mode<synchronous>, transform_indices = @transform_1, window_bounds = array<i64: 72, 128>}, {pipeline_mode = #tpu.pipeline_mode<synchronous>, transform_indices = @transform_2, window_bounds = array<i64: 1, 128>}, {pipeline_mode = #tpu.pipeline_mode<synchronous>, transform_indices = @transform_3, window_bounds = array<i64: 1, 128>}, {transform_indices = @transform_4, window_bounds = array<i64: 128, 128>}]} {
    %c0 = arith.constant 0 : index
    %c0_0 = arith.constant 0 : index
    %0 = vector.load %arg2[%c0, %c0_0] : memref<128x72xf32, #tpu.memory_space<vmem>>, vector<128x72xf32>
    %c0_1 = arith.constant 0 : index
    %c0_2 = arith.constant 0 : index
    %1 = vector.load %arg3[%c0_1, %c0_2] : memref<72x128xf32, #tpu.memory_space<vmem>>, vector<72x128xf32>
    %cst = arith.constant dense<0.000000e+00> : vector<128x128xf32>
    %2 = tpu.matmul %0, %1, %cst {dimension_numbers = #tpu.dot_dimension_numbers<[1], [0], [0], [1], [0, 0, 1, 1], [], []>} : vector<128x72xf32>, vector<72x128xf32>, vector<128x128xf32> -> vector<128x128xf32>
    %c0_i32 = arith.constant 0 : i32
    %3 = arith.cmpi eq, %arg0, %c0_i32 : i32
    %c0_i32_3 = arith.constant 0 : i32
    %4 = arith.cmpi eq, %arg1, %c0_i32_3 : i32
    %5 = arith.andi %3, %4 : i1
    %6 = arith.extui %5 : i1 to i32
    %c0_i32_4 = arith.constant 0 : i32
    %7 = arith.cmpi ne, %6, %c0_i32_4 : i32
    scf.if %7 {
      %cst_11 = arith.constant 0.000000e+00 : f32
      %19 = vector.broadcast %cst_11 : f32 to vector<2x128xf32>
      %c0_12 = arith.constant 0 : index
      %c0_13 = arith.constant 0 : index
      %20 = vector.load %arg7[%c0_12, %c0_13] : memref<2x128xf32, #tpu.memory_space<vmem>>, vector<2x128xf32>
      tpu.vector_store %arg7[%c0_12, %c0_13], %19 {strides = array<i32>} : memref<2x128xf32, #tpu.memory_space<vmem>>, vector<2x128xf32>,
    } else {
    }
    %c0_i32_5 = arith.constant 0 : i32
    %8 = arith.cmpi eq, %arg0, %c0_i32_5 : i32
    %9 = arith.extui %8 : i1 to i32
    %c0_i32_6 = arith.constant 0 : i32
    %10 = arith.cmpi ne, %9, %c0_i32_6 : i32
    scf.if %10 {
      %c0_11 = arith.constant 0 : index
      %c0_12 = arith.constant 0 : index
      %19 = vector.load %arg7[%c0_11, %c0_12] : memref<2x128xf32, #tpu.memory_space<vmem>>, vector<1x128xf32>
      %cst_13 = arith.constant dense<0.000000e+00> : vector<128xf32>
      %20 = vector.multi_reduction <add>, %2, %cst_13 [0] : vector<128x128xf32> to vector<128xf32>
      %21 = vector.shape_cast %20 : vector<128xf32> to vector<1x128xf32>
      %22 = arith.addf %19, %21 : vector<1x128xf32>
      %c0_14 = arith.constant 0 : index
      %c0_15 = arith.constant 0 : index
      %23 = vector.load %arg7[%c0_14, %c0_15] : memref<2x128xf32, #tpu.memory_space<vmem>>, vector<1x128xf32>
      tpu.vector_store %arg7[%c0_14, %c0_15], %22 {strides = array<i32>} : memref<2x128xf32, #tpu.memory_space<vmem>>, vector<1x128xf32>,
      %c1 = arith.constant 1 : index
      %c0_16 = arith.constant 0 : index
      %24 = vector.load %arg7[%c1, %c0_16] : memref<2x128xf32, #tpu.memory_space<vmem>>, vector<1x128xf32>
      %25 = arith.mulf %2, %2 : vector<128x128xf32>
      %cst_17 = arith.constant dense<0.000000e+00> : vector<128xf32>
      %26 = vector.multi_reduction <add>, %25, %cst_17 [0] : vector<128x128xf32> to vector<128xf32>
      %27 = vector.shape_cast %26 : vector<128xf32> to vector<1x128xf32>
      %28 = arith.addf %24, %27 : vector<1x128xf32>
      %c1_18 = arith.constant 1 : index
      %c0_19 = arith.constant 0 : index
      %29 = vector.load %arg7[%c1_18, %c0_19] : memref<2x128xf32, #tpu.memory_space<vmem>>, vector<1x128xf32>
      tpu.vector_store %arg7[%c1_18, %c0_19], %28 {strides = array<i32>} : memref<2x128xf32, #tpu.memory_space<vmem>>, vector<1x128xf32>,
    } else {
    }
    %c1_i32 = arith.constant 1 : i32
    %11 = arith.cmpi eq, %arg0, %c1_i32 : i32
    %c0_i32_7 = arith.constant 0 : i32
    %12 = arith.cmpi eq, %arg1, %c0_i32_7 : i32
    %13 = arith.andi %11, %12 : i1
    %14 = arith.extui %13 : i1 to i32
    %c0_i32_8 = arith.constant 0 : i32
    %15 = arith.cmpi ne, %14, %c0_i32_8 : i32
    scf.if %15 {
      %c0_11 = arith.constant 0 : index
      %c0_12 = arith.constant 0 : index
      %19 = vector.load %arg7[%c0_11, %c0_12] : memref<2x128xf32, #tpu.memory_space<vmem>>, vector<1x128xf32>
      %cst_13 = arith.constant 0.001953125 : f32
      %20 = vector.broadcast %cst_13 : f32 to vector<1x128xf32>
      %21 = arith.mulf %19, %20 : vector<1x128xf32>
      %c1 = arith.constant 1 : index
      %c0_14 = arith.constant 0 : index
      %22 = vector.load %arg7[%c1, %c0_14] : memref<2x128xf32, #tpu.memory_space<vmem>>, vector<1x128xf32>
      %cst_15 = arith.constant 0.001953125 : f32
      %23 = vector.broadcast %cst_15 : f32 to vector<1x128xf32>
      %24 = arith.mulf %22, %23 : vector<1x128xf32>
      %25 = arith.mulf %21, %21 : vector<1x128xf32>
      %26 = arith.subf %24, %25 : vector<1x128xf32>
      %c0_16 = arith.constant 0 : index
      %c0_17 = arith.constant 0 : index
      %27 = vector.load %arg4[%c0_16, %c0_17] : memref<1x128xf32, #tpu.memory_space<vmem>>, vector<1x128xf32>
      %cst_18 = arith.constant 9.99999974E-6 : f32
      %28 = vector.broadcast %cst_18 : f32 to vector<1x128xf32>
      %29 = arith.addf %26, %28 : vector<1x128xf32>
      %30 = math.rsqrt %29 : vector<1x128xf32>
      %31 = arith.mulf %27, %30 : vector<1x128xf32>
      %c0_19 = arith.constant 0 : index
      %c0_20 = arith.constant 0 : index
      %32 = vector.load %arg8[%c0_19, %c0_20] : memref<2x128xf32, #tpu.memory_space<vmem>>, vector<1x128xf32>
      tpu.vector_store %arg8[%c0_19, %c0_20], %31 {strides = array<i32>} : memref<2x128xf32, #tpu.memory_space<vmem>>, vector<1x128xf32>,
      %c0_21 = arith.constant 0 : index
      %c0_22 = arith.constant 0 : index
      %33 = vector.load %arg5[%c0_21, %c0_22] : memref<1x128xf32, #tpu.memory_space<vmem>>, vector<1x128xf32>
      %34 = arith.mulf %21, %31 : vector<1x128xf32>
      %35 = arith.subf %33, %34 : vector<1x128xf32>
      %c1_23 = arith.constant 1 : index
      %c0_24 = arith.constant 0 : index
      %36 = vector.load %arg8[%c1_23, %c0_24] : memref<2x128xf32, #tpu.memory_space<vmem>>, vector<1x128xf32>
      tpu.vector_store %arg8[%c1_23, %c0_24], %35 {strides = array<i32>} : memref<2x128xf32, #tpu.memory_space<vmem>>, vector<1x128xf32>,
    } else {
    }
    %c1_i32_9 = arith.constant 1 : i32
    %16 = arith.cmpi eq, %arg0, %c1_i32_9 : i32
    %17 = arith.extui %16 : i1 to i32
    %c0_i32_10 = arith.constant 0 : i32
    %18 = arith.cmpi ne, %17, %c0_i32_10 : i32
    scf.if %18 {
      %c0_11 = arith.constant 0 : index
      %c0_12 = arith.constant 0 : index
      %19 = vector.load %arg8[%c0_11, %c0_12] : memref<2x128xf32, #tpu.memory_space<vmem>>, vector<1x128xf32>
      %c1 = arith.constant 1 : index
      %c0_13 = arith.constant 0 : index
      %20 = vector.load %arg8[%c1, %c0_13] : memref<2x128xf32, #tpu.memory_space<vmem>>, vector<1x128xf32>
      %21 = vector.broadcast %19 : vector<1x128xf32> to vector<128x128xf32>
      %22 = arith.mulf %2, %21 : vector<128x128xf32>
      %23 = vector.broadcast %20 : vector<1x128xf32> to vector<128x128xf32>
      %24 = arith.addf %22, %23 : vector<128x128xf32>
      %cst_14 = arith.constant 0.000000e+00 : f32
      %25 = vector.broadcast %cst_14 : f32 to vector<128x128xf32>
      %26 = arith.maximumf %24, %25 : vector<128x128xf32>
      %c0_15 = arith.constant 0 : index
      %c0_16 = arith.constant 0 : index
      %27 = vector.load %arg6[%c0_15, %c0_16] : memref<128x128xf32, #tpu.memory_space<vmem>>, vector<128x128xf32>
      tpu.vector_store %arg6[%c0_15, %c0_16], %26 {strides = array<i32>} : memref<128x128xf32, #tpu.memory_space<vmem>>, vector<128x128xf32>,
    } else {
    }
    return
  }
  func.func @transform_0(%arg0: i32, %arg1: i32) -> (i32, i32) {
    %c0_i32 = arith.constant 0 : i32
    %c0_i32_0 = arith.constant 0 : i32
    return %arg1, %c0_i32 : i32, i32
  }
  func.func @transform_1(%arg0: i32, %arg1: i32) -> (i32, i32) {
    %c0_i32 = arith.constant 0 : i32
    %c0_i32_0 = arith.constant 0 : i32
    %c0_i32_1 = arith.constant 0 : i32
    return %c0_i32, %c0_i32_0 : i32, i32
  }
  func.func @transform_2(%arg0: i32, %arg1: i32) -> (i32, i32) {
    %c0_i32 = arith.constant 0 : i32
    %c0_i32_0 = arith.constant 0 : i32
    %c0_i32_1 = arith.constant 0 : i32
    return %c0_i32, %c0_i32_0 : i32, i32
  }
  func.func @transform_3(%arg0: i32, %arg1: i32) -> (i32, i32) {
    %c0_i32 = arith.constant 0 : i32
    %c0_i32_0 = arith.constant 0 : i32
    %c0_i32_1 = arith.constant 0 : i32
    return %c0_i32, %c0_i32_0 : i32, i32
  }
  func.func @transform_4(%arg0: i32, %arg1: i32) -> (i32, i32) {
    %0 = arith.muli %arg1, %arg0 : i32
    %c0_i32 = arith.constant 0 : i32
    %c0_i32_0 = arith.constant 0 : i32
    return %0, %c0_i32 : i32, i32
  }
}

</mosaic_0001>

<bundles_post_ra>
// kernel: tpu_custom_call.1
= control target key start
LH: loop header
LB: loop body
LE: loop exit
PB: predicated region body
PF: predicated region fallthrough
CT: control target
= control target key end

     0   :  { %9 = vsyncpa [#allocation5], 0  ;;  %s1361_s0 = inlined_call_operand.vmem [shape: f32[512,72], index: 0, kind: input, shape index: {}]   ;;  %s1362_s1 = inlined_call_operand.vmem [shape: f32[72,128], index: 1, kind: input, shape index: {}]   ;;  %s1363_s2 = inlined_call_operand.vmem [shape: f32[1,128], index: 2, kind: input, shape index: {}]   ;;  %s1364_s3 = inlined_call_operand.vmem [shape: f32[1,128], index: 3, kind: input, shape index: {}]   ;;  %s1365_s4 = inlined_call_operand.hbm [shape: f32[512,128], index: 4, kind: output, shape index: {}]  }
   0x1   :  { %11 = vsyncpa [#allocation5 + $0x1], 0  ;;  %s1020_s15 = smov 0   ;;  %s1022_s16 = smov 0  }
   0x2   :  { %s1024_s17 = smov 0   ;;  %s1026_s18 = smov 0  }
   0x3   :  { %s1028_s19 = smov 0   ;;  %s1030_s20 = smov 0  }
   0x4   :  { %s1032_s21 = smov 0   ;;  %s1034_s22 = smov 0  }
   0x5 LB: > { %s692_s23 = sadd.s32 4294967295, %s989_s22   ;;  %s693_s24 = sadd.s32 4294967294, %s989_s22   ;;  %s989_s22 = sphi %s1034_s22, %s17_s22   ;;  %s985_s21 = sphi %s1032_s21, %s1375_s21   ;;  %s981_s20 = sphi %s1030_s20, %s1374_s20   ;;  %s977_s19 = sphi %s1028_s19, %s1373_s19   ;;  %s973_s18 = sphi %s1026_s18, %s1372_s18   ;;  %s969_s17 = sphi %s1024_s17, %s1371_s17   ;;  %s965_s16 = sphi %s1022_s16, %s1370_s16   ;;  %s961_s15 = sphi %s1020_s15, %s1369_s15  }
   0x6   : > { %s26_s25 = sadd.s32 1, %s981_s20  ;;  %s29_s26 = sadd.s32 1, %s985_s21 }
   0x7   : > { %p27_p0 = scmp.ge.s32.totalorder %s26_s25, 4  ;;  %s122_s27 = smul.u32 %s981_s20, %s985_s21 }
   0x8   : > { %p137_p1 = scmp.ne.s32.totalorder %s969_s17, %s965_s16  ;;  %p138_p2 = scmp.eq.s32.totalorder %s692_s23, 7 }
   0x9   : > { %s1377_s25 = smov (%p27_p0, %s26_s25), 0  ;;  %s1379_s26 = smov (!%p27_p0, %s29_s26), %s985_s21 }
   0xa   : > { %p143_p3 = scmp.ne.s32.totalorder %s965_s16, %s961_s15  ;;  %p31_p4 = scmp.ge.s32.totalorder %s1379_s26, 2 }
   0xb   : > { %p144_p5 = scmp.eq.s32.totalorder %s693_s24, 7  ;;  %p1073_p6 = por %p138_p2, %p137_p1 }
   0xc   : > { %p696_p7 = scmp.ge.s32.totalorder %s989_s22, 1  ;;  %s1381_s26 = smov (%p31_p4, %s1379_s26), 0 }
   0xd   : > { %p1080_p8 = por %p144_p5, %p143_p3  ;;  %p180_p9 = scmp.lt.s32.totalorder %s989_s22, 9 }
   0xe   : > { %s123_s30 = smul.u32 %s1381_s26, %s1377_s25  ;;  %s127_s6 = sadd.s32 1, %s969_s17 }
   0xf   : > { %p181_p10 = pnand %p696_p7, %p180_p9 }
  0x10   : > { %s124_s5 = ssub.s32 %s122_s27, %s123_s30  ;;  %s203_s8 = sand.u32 (!%p181_p10), 1, %s965_s16   ;;  %v230_v0 = vld [vmem:[%s1362_s1] sm:$0xff] (!%p181_p10)  ;;  %v231_v1 = vld [vmem:[%s1362_s1 + $0x8] sm:$0xff] (!%p181_p10)  ;;  %v232_v2 = vld [vmem:[%s1362_s1 + $0x10] sm:$0xff] (!%p181_p10)  ;;  %vm239_vm0 = vcmask (!%p181_p10), 588800  }
  0x11   : > { %p125_p11 = scmp.eq.s32.totalorder %s124_s5, 0  ;;  %184 = sbr.rel (%p181_p10) target bundleno = 388 (0x184), region = 36  ;;  %v793_v3 = vpack.c.bf16 (!%p181_p10), %v231_v1, %v230_v0  ;;  %v233_v4 = vld [vmem:[%s1362_s1 + $0x18] sm:$0xff] (!%p181_p10)  ;;  %v234_v6 = vld [vmem:[%s1362_s1 + $0x20] sm:$0xff] (!%p181_p10)  ;;  %v235_v7 = vld [vmem:[%s1362_s1 + $0x28] sm:$0xff] (!%p181_p10) }
  0x12   : > { %s698_s23 = sshll.u32 (!%p181_p10), %s973_s18, 4  ;;  %s1104_s24 = sshll.u32 (!%p181_p10), %s203_s8, 7  ;;  %v797_v5 = vpack.c.bf16 (!%p181_p10), %v233_v4, %v232_v2  ;;  %v801_v8 = vpack.c.bf16 (!%p181_p10), %v235_v7, %v234_v6  ;;  %v236_v9 = vld [vmem:[%s1362_s1 + $0x30] sm:$0xff] (!%p181_p10)  ;;  %v237_v10 = vld [vmem:[%s1362_s1 + $0x38] sm:$0xff] (!%p181_p10)  ;;  %v238_v14 = vld [vmem:[%s1362_s1 + $0x40] sm:$0xff] (!%p181_p10) }
  0x13   : > { %s1089_s7 = scalar_select %p125_p11, %s969_s17, %s127_s6  }
  0x14   : > { %p207_p12 = scmp.lt.s32.totalorder (!%p181_p10), %s698_s23, 63  ;;  %794 = vmatprep.subr.bf16.mxu0 (!%p181_p10), %v793_v3  ;;  %809 = vmatprep.subr.bf16.mxu1 (!%p181_p10), %v793_v3  ;;  %v805_v13 = vpack.c.bf16 (!%p181_p10), %v237_v10, %v236_v9  ;;  %p433_p13 = scmp.eq.s32.totalorder (!%p181_p10), %s977_s19, 0 }
  0x15   : > { %796 = vmatpush3.bf16.msra.mxu0 (!%p181_p10), %v793_v3  ;;  %814 = vmatpush3.bf16.msra.mxu1 (!%p181_p10), %v793_v3  ;;  %p434_p0 = scmp.eq.s32.totalorder (!%p181_p10), %s973_s18, 0 }
  0x16   : > { %798 = vmatprep.subr.bf16.mxu0 (!%p181_p10), %v797_v5  ;;  %810 = vmatprep.subr.bf16.mxu1 (!%p181_p10), %v797_v5 }
  0x17   : > { %p1165_p1 = pnand (!%p181_p10), %p434_p0, %p433_p13 }
  0x18   : > { %s1383_s23 = smov (!%p207_p12, %s698_s23), 63  ;;  %v991_v45 = vmov (!%p1165_p1), 0.0  }
  0x19   : > { %s699_s11 = sshll.u32 %s1383_s23, 3  ;;  %800 = vmatpush3.bf16.msra.mxu0 %v797_v5  ;;  %815 = vmatpush3.bf16.msra.mxu1 %v797_v5  ;;  %439 = vst [vmem:[#allocation2] sm:$0x3] (!%p1165_p1), %v991_v45 }
  0x1a   : > { %s1124_s6 = scalar_lea.vmem %s1361_s0, %s699_s11  ;;  %802 = vmatprep.subr.bf16.mxu0 %v801_v8  ;;  %811 = vmatprep.subr.bf16.mxu1 %v801_v8  ;;  %s1202_s11 = scalar_lea.vmem [#allocation4], %s1104_s24 }
  0x1b   : > { %v214_v11 = vld [vmem:[%s1124_s6] sm:$0xff]  ;;  %v215_v15 = vld [vmem:[%s1124_s6 + $0x8] sm:$0xff]  ;;  %v216_v17 = vld [vmem:[%s1124_s6 + $0x10] sm:$0xff] }
  0x1c   : > { %v222_v12 = vld [vmem:[%s1124_s6 + $0x40] sm:$0xff]  ;;  %769 = vmatprep.mubr.msk.f32.mxu0 %vm239_vm0, %v214_v11  ;;  %v223_v16 = vld [vmem:[%s1124_s6 + $0x48] sm:$0xff]  ;;  %v224_v18 = vld [vmem:[%s1124_s6 + $0x50] sm:$0xff] }
  0x1d   : > { %781 = vmatprep.mubr.msk.f32.mxu1 %vm239_vm0, %v222_v12  ;;  %804 = vmatpush3.bf16.msra.mxu0 %v801_v8  ;;  %v217_v19 = vld [vmem:[%s1124_s6 + $0x18] sm:$0xff]  ;;  %v218_v21 = vld [vmem:[%s1124_s6 + $0x20] sm:$0xff]  ;;  %v219_v23 = vld [vmem:[%s1124_s6 + $0x28] sm:$0xff] }
  0x1e   : > { %816 = vmatpush3.bf16.msra.mxu1 %v801_v8  ;;  %806 = vmatprep.subr.bf16.mxu0 %v805_v13  ;;  %v225_v20 = vld [vmem:[%s1124_s6 + $0x58] sm:$0xff]  ;;  %v226_v22 = vld [vmem:[%s1124_s6 + $0x60] sm:$0xff]  ;;  %v227_v24 = vld [vmem:[%s1124_s6 + $0x68] sm:$0xff] }
  0x1f   : > { %812 = vmatprep.subr.bf16.mxu1 %v805_v13  ;;  %v220_v25 = vld [vmem:[%s1124_s6 + $0x30] sm:$0xff]  ;;  %v221_v27 = vld [vmem:[%s1124_s6 + $0x38] sm:$0xff] }
  0x20   : > { %v228_v26 = vld [vmem:[%s1124_s6 + $0x70] sm:$0xff]  ;;  %v229_v28 = vld [vmem:[%s1124_s6 + $0x78] sm:$0xff] }
  0x21   : > { %808 = vmatpush3.bf16.msra.mxu0 %v805_v13 }
  0x22   : > { %817 = vmatpush3.bf16.msra.mxu1 %v805_v13  ;;  %767 = vmatprep.subr.mxu0 %v238_v14 }
  0x23   : > { %813 = vmatprep.subr.mxu1 %v238_v14 }
  0x25   : > { %768 = vmatpush3.msra.mxu0 %v238_v14 }
  0x26   : > { %818 = vmatpush3.msra.mxu1 %v238_v14  ;;  %770 = vmatmul.mubr.msk.f32.vlgmr.msra.gmra.mrb[0].mxu0 %vm239_vm0, %v215_v15 }
  0x27   : > { %782 = vmatmul.mubr.msk.f32.vlgmr.msra.gmra.mrb[0].mxu1 %vm239_vm0, %v223_v16  ;;  %772 = vmatprep.mubr.msk.f32.mxu0 %vm239_vm0, %v216_v17 }
  0x28   : > { %784 = vmatprep.mubr.msk.f32.mxu1 %vm239_vm0, %v224_v18 }
  0x2a   : > { %773 = vmatmul.mubr.msk.f32.gmra.mrb[2].mxu0 %vm239_vm0, %v217_v19 }
  0x2b   : > { %785 = vmatmul.mubr.msk.f32.gmra.mrb[2].mxu1 %vm239_vm0, %v225_v20  ;;  %775 = vmatprep.mubr.msk.f32.mxu0 %vm239_vm0, %v218_v21 }
  0x2c   : > { %787 = vmatprep.mubr.msk.f32.mxu1 %vm239_vm0, %v226_v22 }
  0x2e   : > { %776 = vmatmul.mubr.msk.f32.gmra.mrb[4].mxu0 %vm239_vm0, %v219_v23 }
  0x2f   : > { %788 = vmatmul.mubr.msk.f32.gmra.mrb[4].mxu1 %vm239_vm0, %v227_v24  ;;  %778 = vmatprep.mubr.msk.f32.mxu0 %vm239_vm0, %v220_v25 }
  0x30   : > { %790 = vmatprep.mubr.msk.f32.mxu1 %vm239_vm0, %v228_v26 }
  0x32   : > { %779 = vmatmul.mubr.msk.f32.gmra.mrb[6].mxu0 %vm239_vm0, %v221_v27 }
  0x33   : > { %791 = vmatmul.mubr.msk.f32.gmra.mrb[6].mxu1 %vm239_vm0, %v229_v28 }
  0xf9   : > { %v1169_v29 = vpop.f32.mrb[0].mxu0 }
  0xfa   : > { %v1171_v30 = vpop.f32.mrb[0].mxu1  ;;  %v1173_v31 = vpop.f32.mrb[1].mxu0 }
  0xfb   : > { %v1175_v32 = vpop.f32.mrb[1].mxu1 }
  0xfd   : > { %v1177_v33 = vpop.f32.mrb[2].mxu0 }
  0xfe   : > { %v1179_v34 = vpop.f32.mrb[2].mxu1  ;;  %v1181_v35 = vpop.f32.mrb[3].mxu0 }
  0xff   : > { %v1183_v36 = vpop.f32.mrb[3].mxu1 }
 0x101   : > { %v1185_v37 = vpop.f32.mrb[4].mxu0  ;;  %438 = sbr.rel (%p1165_p1) target bundleno = 264 (0x108), region = 40 }
 0x102   : > { %v1187_v38 = vpop.f32.mrb[4].mxu1  ;;  %v1189_v39 = vpop.f32.mrb[5].mxu0 }
 0x103   : > { %v1191_v40 = vpop.f32.mrb[5].mxu1 }
 0x105   : > { %v1193_v41 = vpop.f32.mrb[6].mxu0 }
 0x106   : > { %v1195_v42 = vpop.f32.mrb[6].mxu1  ;;  %v1197_v43 = vpop.f32.mrb[7].mxu0 }
 0x107   : > { %v1199_v44 = vpop.f32.mrb[7].mxu1 }
 0x108 PF: > { %p716_p2 = scmp.ne.s32.totalorder %s977_s19, 0 }
 0x109   : > { %v444_v46 = vadd.f32 (!%p716_p2), %v1169_v29, %v1173_v31  ;;  %v468_v47 = vmul.f32 (!%p716_p2), %v1173_v31, %v1173_v31  ;;  %v469_v48 = vmul.f32 (!%p716_p2), %v1169_v29, %v1169_v29  ;;  %v470_v50 = vmul.f32 (!%p716_p2), %v1181_v35, %v1181_v35 }
 0x10a   : > { %442 = sbr.rel (%p716_p2) target bundleno = 312 (0x138), region = 44  ;;  %v471_v52 = vmul.f32 (!%p716_p2), %v1177_v33, %v1177_v33  ;;  %v472_v55 = vmul.f32 (!%p716_p2), %v1189_v39, %v1189_v39  ;;  %v473_v58 = vmul.f32 (!%p716_p2), %v1185_v37, %v1185_v37  ;;  %v474_v61 = vmul.f32 (!%p716_p2), %v1197_v43, %v1197_v43 }
 0x10b   : > { %v445_v49 = vadd.f32 (!%p716_p2), %v444_v46, %v1181_v35  ;;  %v484_v53 = vadd.f32 (!%p716_p2), %v469_v48, %v468_v47  ;;  %v475_v0 = vmul.f32 (!%p716_p2), %v1193_v41, %v1193_v41  ;;  %v476_v3 = vmul.f32 (!%p716_p2), %v1175_v32, %v1175_v32 }
 0x10c   : > { %v477_v6 = vmul.f32 (!%p716_p2), %v1171_v30, %v1171_v30  ;;  %v478_v9 = vmul.f32 (!%p716_p2), %v1183_v36, %v1183_v36  ;;  %v479_v12 = vmul.f32 (!%p716_p2), %v1179_v34, %v1179_v34  ;;  %v480_v15 = vmul.f32 (!%p716_p2), %v1191_v40, %v1191_v40 }
 0x10d   : > { %v446_v51 = vadd.f32 (!%p716_p2), %v1177_v33, %v445_v49  ;;  %v485_v56 = vadd.f32 (!%p716_p2), %v484_v53, %v470_v50  ;;  %v481_v18 = vmul.f32 (!%p716_p2), %v1187_v38, %v1187_v38  ;;  %v482_v21 = vmul.f32 (!%p716_p2), %v1199_v44, %v1199_v44 }
 0x10e   : > { %v483_v24 = vmul.f32 (!%p716_p2), %v1195_v42, %v1195_v42 }
 0x10f   : > { %v447_v54 = vadd.f32 (!%p716_p2), %v446_v51, %v1189_v39  ;;  %v486_v59 = vadd.f32 (!%p716_p2), %v485_v56, %v471_v52  ;;  %v443_v52 = vld [vmem:[#allocation2] sm:$0x1] (!%p716_p2) }
 0x111   : > { %v448_v57 = vadd.f32 %v1185_v37, %v447_v54  ;;  %v487_v62 = vadd.f32 %v486_v59, %v472_v55 }
 0x113   : > { %v449_v60 = vadd.f32 %v448_v57, %v1197_v43  ;;  %v488_v1 = vadd.f32 %v487_v62, %v473_v58  ;;  %v467_v57 = vld [vmem:[#allocation2 + $0x1] sm:$0x1] }
 0x115   : > { %v450_v63 = vadd.f32 %v1193_v41, %v449_v60  ;;  %v489_v4 = vadd.f32 %v488_v1, %v474_v61 }
 0x117   : > { %v451_v2 = vadd.f32 %v450_v63, %v1175_v32  ;;  %v490_v7 = vadd.f32 %v489_v4, %v475_v0 }
 0x119   : > { %v452_v5 = vadd.f32 %v1171_v30, %v451_v2  ;;  %v491_v10 = vadd.f32 %v490_v7, %v476_v3 }
 0x11b   : > { %v453_v8 = vadd.f32 %v452_v5, %v1183_v36  ;;  %v492_v13 = vadd.f32 %v491_v10, %v477_v6 }
 0x11d   : > { %v454_v11 = vadd.f32 %v1179_v34, %v453_v8  ;;  %v493_v16 = vadd.f32 %v492_v13, %v478_v9 }
 0x11f   : > { %v455_v14 = vadd.f32 %v454_v11, %v1191_v40  ;;  %v494_v19 = vadd.f32 %v493_v16, %v479_v12 }
 0x121   : > { %v456_v17 = vadd.f32 %v1187_v38, %v455_v14  ;;  %v495_v22 = vadd.f32 %v494_v19, %v480_v15 }
 0x123   : > { %v457_v20 = vadd.f32 %v456_v17, %v1199_v44  ;;  %v496_v25 = vadd.f32 %v495_v22, %v481_v18 }
 0x125   : > { %v458_v23 = vadd.f32 %v1195_v42, %v457_v20  ;;  %v497_v27 = vadd.f32 %v496_v25, %v482_v21 }
 0x127   : > { %v459_v26 = vrot.slane %v458_v23, 4  ;;  %v498_v45 = vadd.f32 %v497_v27, %v483_v24 }
 0x129   : > { %v460_v28 = vadd.f32 %v459_v26, %v458_v23  ;;  %v499_v47 = vrot.slane %v498_v45, 4 }
 0x12b   : > { %v461_v46 = vrot.slane %v460_v28, 2  ;;  %v500_v49 = vadd.f32 %v499_v47, %v498_v45 }
 0x12d   : > { %v462_v48 = vadd.f32 %v461_v46, %v460_v28  ;;  %v501_v51 = vrot.slane %v500_v49, 2 }
 0x12f   : > { %v463_v50 = vrot.slane %v462_v48, 1  ;;  %v502_v54 = vadd.f32 %v501_v51, %v500_v49 }
 0x131   : > { %v464_v53 = vadd.f32 %v463_v50, %v462_v48  ;;  %v503_v56 = vrot.slane %v502_v54, 1 }
 0x133   : > { %v465_v55 = vadd.f32 %v464_v53, %v443_v52  ;;  %v504_v58 = vadd.f32 %v503_v56, %v502_v54 }
 0x135   : > { %466 = vst [vmem:[#allocation2] sm:$0x1] %v465_v55  ;;  %v505_v59 = vadd.f32 %v504_v58, %v467_v57 }
 0x137   : > { %506 = vst [vmem:[#allocation2 + $0x1] sm:$0x1] %v505_v59 }
 0x138 PF: > { %p507_p3 = scmp.eq.s32.totalorder %s977_s19, 1 }
 0x13a   : > { %p508_p4 = pnand %p507_p3, %p434_p0 }
 0x13b   : > { %v518_v3 = vld [vmem:[%s1363_s2] sm:$0x1] (!%p508_p4) }
 0x13c   : > { %511 = sbr.rel (%p508_p4) target bundleno = 343 (0x157), region = 48  ;;  %v512_v60 = vld [vmem:[#allocation2] sm:$0x1] (!%p508_p4) }
 0x13d   : > { %v513_v62 = vmul.f32 (!%p508_p4), 0.001953125, %v512_v60  ;;  %v523_v6 = vld [vmem:[%s1364_s3] sm:$0x1] (!%p508_p4) }
 0x13e   : > { %v514_v61 = vld [vmem:[#allocation2 + $0x1] sm:$0x1] (!%p508_p4) }
 0x13f   : > { %v515_v63 = vmul.f32 (!%p508_p4), 0.001953125, %v514_v61  ;;  %v516_v0 = vmul.f32 (!%p508_p4), %v513_v62, %v513_v62 }
 0x141   : > { %v517_v1 = vsub.f32 (!%p508_p4), %v515_v63, %v516_v0 }
 0x143   : > { %v519_v2 = vadd.f32 1e-05, %v517_v1 }
 0x145   : > { %893 = vrsqrt.f32 %v519_v2 }
 0x14f   : > { %v894_v4 = vpop.eup %893 }
 0x150   : > { %v521_v5 = vmul.f32 %v894_v4, %v518_v3 }
 0x152   : > { %522 = vst [vmem:[#allocation3] sm:$0x1] %v521_v5  ;;  %v524_v7 = vmul.f32 %v521_v5, %v513_v62 }
 0x154   : > { %v525_v8 = vsub.f32 %v523_v6, %v524_v7 }
 0x156   : > { %526 = vst [vmem:[#allocation3 + $0x1] sm:$0x1] %v525_v8 }
 0x157 PF: > { %p717_p5 = scmp.ne.s32.totalorder %s977_s19, 1 }
 0x159   : > { %529 = sbr.rel (%p717_p5) target bundleno = 362 (0x16a), region = 52  ;;  %v718_v9 = vld [vmem:[#allocation3] ss:$0 sm:$0xff] (!%p717_p5) }
 0x15a   : > { %v536_v11 = vmul.f32 (!%p717_p5), %v718_v9, %v1173_v31  ;;  %v537_v12 = vmul.f32 (!%p717_p5), %v1169_v29, %v718_v9  ;;  %v538_v13 = vmul.f32 (!%p717_p5), %v718_v9, %v1181_v35  ;;  %v539_v14 = vmul.f32 (!%p717_p5), %v1177_v33, %v718_v9 }
 0x15b   : > { %v540_v15 = vmul.f32 (!%p717_p5), %v718_v9, %v1189_v39  ;;  %v541_v16 = vmul.f32 (!%p717_p5), %v1185_v37, %v718_v9  ;;  %v542_v17 = vmul.f32 (!%p717_p5), %v718_v9, %v1197_v43  ;;  %v543_v18 = vmul.f32 (!%p717_p5), %v1193_v41, %v718_v9 }
 0x15c   : > { %v544_v27 = vmul.f32 (!%p717_p5), %v718_v9, %v1175_v32  ;;  %v545_v28 = vmul.f32 (!%p717_p5), %v1171_v30, %v718_v9  ;;  %v546_v45 = vmul.f32 (!%p717_p5), %v718_v9, %v1183_v36  ;;  %v547_v46 = vmul.f32 (!%p717_p5), %v1179_v34, %v718_v9 }
 0x15d   : > { %v719_v10 = vld [vmem:[#allocation3 + $0x1] ss:$0 sm:$0xff] (!%p717_p5)  ;;  %v548_v47 = vmul.f32 (!%p717_p5), %v718_v9, %v1191_v40  ;;  %v549_v48 = vmul.f32 (!%p717_p5), %v1187_v38, %v718_v9  ;;  %v550_v49 = vmul.f32 (!%p717_p5), %v718_v9, %v1199_v44  ;;  %v551_v50 = vmul.f32 (!%p717_p5), %v1195_v42, %v718_v9 }
 0x15e   : > { %v556_v19 = vadd.f32 (!%p717_p5), %v719_v10, %v536_v11  ;;  %v557_v20 = vadd.f32 (!%p717_p5), %v719_v10, %v537_v12  ;;  %v558_v21 = vadd.f32 (!%p717_p5), %v719_v10, %v538_v13  ;;  %v559_v31 = vadd.f32 (!%p717_p5), %v719_v10, %v539_v14 }
 0x15f   : > { %v560_v29 = vadd.f32 (!%p717_p5), %v719_v10, %v540_v15  ;;  %v561_v35 = vadd.f32 (!%p717_p5), %v719_v10, %v541_v16  ;;  %v562_v22 = vadd.f32 (!%p717_p5), %v719_v10, %v542_v17  ;;  %v563_v33 = vadd.f32 (!%p717_p5), %v719_v10, %v543_v18 }
 0x160   : > { %v572_v23 = vmax.f32 %v556_v19, 0.0  ;;  %v573_v39 = vmax.f32 %v557_v20, 0.0  ;;  %v574_v37 = vmax.f32 %v558_v21, 0.0  ;;  %v575_v43 = vmax.f32 %v559_v31, 0.0 }
 0x161   : > { %v576_v41 = vmax.f32 %v560_v29, 0.0  ;;  %v577_v24 = vmax.f32 %v561_v35, 0.0  ;;  %v578_v25 = vmax.f32 %v562_v22, 0.0  ;;  %v579_v26 = vmax.f32 %v563_v33, 0.0 }
 0x162   : > { %588 = vst [vmem:[%s1202_s11] sm:$0xff] %v572_v23  ;;  %589 = vst [vmem:[%s1202_s11 + $0x8] sm:$0xff] %v573_v39  ;;  %v564_v51 = vadd.f32 %v719_v10, %v544_v27  ;;  %v565_v32 = vadd.f32 %v719_v10, %v545_v28  ;;  %v566_v30 = vadd.f32 %v719_v10, %v546_v45 }
 0x163   : > { %590 = vst [vmem:[%s1202_s11 + $0x10] sm:$0xff] %v574_v37  ;;  %591 = vst [vmem:[%s1202_s11 + $0x18] sm:$0xff] %v575_v43  ;;  %v567_v36 = vadd.f32 %v719_v10, %v547_v46  ;;  %v568_v34 = vadd.f32 %v719_v10, %v548_v47  ;;  %v569_v52 = vadd.f32 %v719_v10, %v549_v48 }
 0x164   : > { %592 = vst [vmem:[%s1202_s11 + $0x20] sm:$0xff] %v576_v41  ;;  %593 = vst [vmem:[%s1202_s11 + $0x28] sm:$0xff] %v577_v24  ;;  %v570_v53 = vadd.f32 %v719_v10, %v550_v49  ;;  %v571_v40 = vadd.f32 %v719_v10, %v551_v50  ;;  %v580_v38 = vmax.f32 %v564_v51, 0.0  ;;  %v581_v44 = vmax.f32 %v565_v32, 0.0 }
 0x165   : > { %594 = vst [vmem:[%s1202_s11 + $0x30] sm:$0xff] %v578_v25  ;;  %595 = vst [vmem:[%s1202_s11 + $0x38] sm:$0xff] %v579_v26  ;;  %v582_v54 = vmax.f32 %v566_v30, 0.0  ;;  %v583_v42 = vmax.f32 %v567_v36, 0.0  ;;  %v584_v55 = vmax.f32 %v568_v34, 0.0  ;;  %v585_v56 = vmax.f32 %v569_v52, 0.0 }
 0x166   : > { %v586_v57 = vmax.f32 %v570_v53, 0.0  ;;  %v587_v58 = vmax.f32 %v571_v40, 0.0  ;;  %596 = vst [vmem:[%s1202_s11 + $0x40] sm:$0xff] %v580_v38  ;;  %597 = vst [vmem:[%s1202_s11 + $0x48] sm:$0xff] %v581_v44 }
 0x167   : > { %598 = vst [vmem:[%s1202_s11 + $0x50] sm:$0xff] %v582_v54  ;;  %599 = vst [vmem:[%s1202_s11 + $0x58] sm:$0xff] %v583_v42 }
 0x168   : > { %600 = vst [vmem:[%s1202_s11 + $0x60] sm:$0xff] %v584_v55  ;;  %601 = vst [vmem:[%s1202_s11 + $0x68] sm:$0xff] %v585_v56 }
 0x169   : > { %602 = vst [vmem:[%s1202_s11 + $0x70] sm:$0xff] %v586_v57  ;;  %603 = vst [vmem:[%s1202_s11 + $0x78] sm:$0xff] %v587_v58 }
 0x16a PF: > { %s612_s27 = smul.u32 %s973_s18, %s977_s19  ;;  %s619_s30 = sshll.u32 %s1202_s11, 4  ;;  %s1300_s30 = int_to_ptr.vmem [resolvable:$true] %s619_s30 }
 0x16b   : > { %s1309_s10 = scalar_lea.sflag [#allocation5], %s203_s8  ;;  %s895_s24 = scalar_lea.vmem %s1300_s30, 2048 }
 0x16c   : > { %s725_s5 = sshll.u32 %s612_s27, 11  ;;  %p896_p7 = scmp.ne.s32.totalorder %s1300_s30, %s895_s24 }
 0x16d   : > { %s1305_s9 = scalar_lea.hbm %s1365_s4, %s725_s5  ;;  %s992_s18 = smov [#allocation4]  }
 0x16e   : > { %p897_p9 = pnand %p896_p7, %p1073_p6  ;;  %s899_s19 = sshll.u32 %s992_s18, 4  ;;  %s900_s19 = int_to_ptr.vmem [resolvable:$false] %s899_s19 }
 0x16f   : > { %s901_s11 = scalar_lea.vmem %s900_s19, 4096  ;;  %p902_p11 = scmp.lt.s32.totalorder %s1300_s30, %s900_s19 }
 0x170   : > { %p898_p10 = pneg %p897_p9  ;;  %p903_p12 = scmp.lt.s32.totalorder %s901_s11, %s895_s24 }
 0x172   : > { %p904_p13 = por %p903_p12, %p902_p11 }
 0x174   : > { %p905_p0 = pnand %p904_p13, %p898_p10 }
 0x176   : > { %908 = shalt.err (!%p905_p0)
}
 0x177   : > { %s909_s8 = scalar_lea.hbm %s1305_s9, 2048  ;;  %s913_s14 = scalar_lea.hbm %s1365_s4, 8192 }
 0x178   : > { %p910_p1 = scmp.ne.s32.totalorder %s1305_s9, %s909_s8  ;;  %p914_p4 = scmp.lt.u32.totalorder %s1305_s9, %s1365_s4 }
 0x179   : > { %p915_p5 = scmp.lt.u32.totalorder %s913_s14, %s909_s8  ;;  %p917_p9 = scmp.lt.u32.totalorder %s909_s8, %s1305_s9 }
 0x17a   : > { %p911_p2 = pnand %p910_p1, %p1073_p6 }
 0x17b   : > { %p916_p7 = por %p915_p5, %p914_p4 }
 0x17c   : > { %p912_p3 = pneg %p911_p2 }
 0x17d   : > { %p918_p10 = por %p917_p9, %p916_p7 }
 0x17f   : > { %p919_p11 = pnand %p918_p10, %p912_p3 }
 0x181   : > { %922 = shalt.err (!%p919_p11)
}
 0x182   : > { %s993_s6 = smov 128   ;;  %s994_s23 = smov 8  }
 0x183   : > { %819 = dma.vmem_to_hbm [thread:$0]  (%p1073_p6), %s1300_s30, 2048, %s1305_s9, %s1309_s10, %s993_s6, %s993_s6, %s994_s23  }
 0x184 PF: > { %p825_p12 = scmp.ge.s32.totalorder %s989_s22, 2  ;;  %s634_s24 = sand.u32 1, %s961_s15  }
 0x185   : > { %s635_s18 = scalar_lea.sflag [#allocation5], %s634_s24 }
 0x186   : > { %p822_p13 = pnand %p825_p12, %p1080_p8 }
 0x188   : > { %956 = dma.done.wait (!%p822_p13), %s635_s18, 2048  }
 0x189   : > { %958 = vsyncadd (!%p822_p13), %s635_s18, 4294965248  ;;  %s17_s22 = sadd.s32 1, %s989_s22   ;;  %s1369_s15 = smov %s965_s16 }
 0x18a   : > { %p14_p0 = scmp.ge.s32.totalorder %s17_s22, 10   ;;  %s1370_s16 = smov %s969_s17 }
 0x18b   : > { %s1371_s17 = smov %s1089_s7  ;;  %s1372_s18 = smov %s981_s20 }
 0x18c   : > { %s1373_s19 = smov %s985_s21  ;;  %s1374_s20 = smov %s1377_s25 }
 0x18d   : > { %s1375_s21 = smov %s1381_s26  ;;  %16 = sbr.rel (!%p14_p0) target bundleno = 5 (0x5), region = 87 }
 0x194   :  { %640 = vsyncpa [#allocation5], 1 }
 0x195   :  { %642 = vsyncpa [#allocation5 + $0x1], 1 }

</bundles_post_ra>
